<compile_context>
chip_gen: v7x
topology: tpu7x:2x2x1
jax: 0.10.0
libtpu: 0.0.40
codegen_flags: <defaults>
</compile_context>

<pallas_src>
import functools

import jax
import jax.numpy as jnp
from jax.experimental import pallas as pl
from jax.experimental.pallas import tpu as pltpu

LANES = 128
ROW_ALIGN = 32                       # legal/efficient for f32, bf16, int8/fp8 packing
TARGET_BLOCK_BYTES = 2 * 1024 * 1024 # per-step input bytes, dtype independent
VMEM_LIMIT_BYTES = 32 * 1024 * 1024  # safe on v5e/v6e (128 MiB phys) and v7x (64 MiB)

_INV_SQRT2 = 0.7071067811865476      # 1/sqrt(2)

_NATIVE_DTYPE_ACTS = ("relu", "leaky_relu")


def _round_up(a, b):
    return ((a + b - 1) // b) * b


def _act_math(x, act_fun: str):
    """Elementwise activation matching torch.nn.functional semantics.

    relu/leaky_relu stay in the input dtype (exact).  Transcendental acts
    compute in f32; caller casts back to the storage dtype exactly once.
    """
    if act_fun == "relu":
        return jnp.maximum(x, 0)
    if act_fun == "leaky_relu":
        return jnp.where(x >= 0, x, x * 0.01)

    xf = x.astype(jnp.float32)
    if act_fun == "gelu":
        # torch F.gelu default = exact (erf) gelu
        return 0.5 * xf * (1.0 + jax.lax.erf(xf * _INV_SQRT2))
    if act_fun in ("gelu_tanh", "gelu_approx"):
        # tanh-form gelu: transcendental moves to the EUP slot (perf escape
        # hatch for v6e/v7x); numerics differ slightly from exact erf gelu.
        return jax.nn.gelu(xf, approximate=True)
    if act_fun in ("silu", "swish"):
        return xf * jax.nn.sigmoid(xf)
    if act_fun == "sigmoid":
        return jax.nn.sigmoid(xf)
    if act_fun == "tanh":
        return jnp.tanh(xf)
    raise ValueError(f"unsupported act_fun: {act_fun}")


def _apply_act(x, act_fun: str):
    """Reference / tail-path activation (result cast back to x.dtype)."""
    return _act_math(x, act_fun).astype(x.dtype)


def _act_kernel(x_ref, o_ref, *, act_fun: str):
    o_ref[...] = _act_math(x_ref[...], act_fun).astype(o_ref.dtype)


def _run_slab(slab, act_fun: str, donate: bool):
    """Run the activation kernel over a lane-dense (rows, 128) slab."""
    rows = slab.shape[0]
    itemsize = jnp.dtype(slab.dtype).itemsize

    # Byte-budgeted block rows (multiple of 32 -> legal for packed dtypes).
    budget_rows = max(
        ROW_ALIGN, (TARGET_BLOCK_BYTES // (LANES * itemsize)) // ROW_ALIGN * ROW_ALIGN
    )
    if rows <= 2 * ROW_ALIGN:
        # Tiny slab: single full-extent block (always a legal block shape).
        block_rows = rows
    else:
        # At least 2 (balanced) grid steps so both v7x TensorCores get work.
        balanced_rows = _round_up(pl.cdiv(rows, 2), ROW_ALIGN)
        block_rows = min(budget_rows, balanced_rows)
    grid = (pl.cdiv(rows, block_rows),)

    return pl.pallas_call(
        functools.partial(_act_kernel, act_fun=act_fun),
        out_shape=jax.ShapeDtypeStruct((rows, LANES), slab.dtype),
        grid_spec=pltpu.PrefetchScalarGridSpec(
            num_scalar_prefetch=0,
            grid=grid,
            in_specs=[pl.BlockSpec((block_rows, LANES), lambda i: (i, 0))],
            out_specs=pl.BlockSpec((block_rows, LANES), lambda i: (i, 0)),
        ),
        compiler_params=pltpu.CompilerParams(
            dimension_semantics=("parallel",),
            vmem_limit_bytes=VMEM_LIMIT_BYTES,
        ),
        input_output_aliases=({0: 0} if donate else {}),
    )(slab)


def act_layer(x, act_fun: str = "gelu", donate: bool = False):
    """Pallas equivalent of ActLayer(act_fun)(x) for any-shape tensor."""
    orig_shape = x.shape
    n_elem = x.size
    if n_elem == 0:
        return x

    # Fast path: numel % 128 == 0 (usual for conv activations) -> the reshape
    # to a lane-dense slab is free and there is no pad / tail handling.
    if n_elem % LANES == 0:
        rows = n_elem // LANES
        out = _run_slab(x.reshape(rows, LANES), act_fun, donate=donate)
        return out.reshape(orig_shape)

    # Ragged fallback: kernel over the 128-aligned prefix, tiny (<128 elem)
    # tail in plain jnp, then reassemble.  No padded garbage is ever computed.
    rows_main = n_elem // LANES
    split = rows_main * LANES
    flat = x.reshape(-1)
    tail_out = _apply_act(flat[split:], act_fun)
    if rows_main == 0:
        return tail_out.reshape(orig_shape)
    main_out = _run_slab(flat[:split].reshape(rows_main, LANES), act_fun, donate=False)
    return jnp.concatenate([main_out.reshape(-1), tail_out]).reshape(orig_shape)


if __name__ == "__main__":
    key = jax.random.PRNGKey(0)

    # NCHW input, small shapes: batch=2, channels=4, spatial=16x16.
    x = jax.random.normal(key, (2, 4, 16, 16), dtype=jnp.float32)
    for act_fun in ("gelu", "gelu_tanh", "relu", "silu", "leaky_relu",
                    "sigmoid", "tanh"):
        y = jax.block_until_ready(act_layer(x, act_fun))
        y_ref = _apply_act(x, act_fun)
        assert y.shape == x.shape and y.dtype == x.dtype
        assert jnp.allclose(y, y_ref, atol=1e-5, rtol=1e-5), act_fun

    # Multi-step grid with a masked partial final block (rows=100, 2 steps).
    k1 = jax.random.PRNGKey(1)
    x_big = jax.random.normal(k1, (2, 4, 40, 40), dtype=jnp.float32)
    y_big = jax.block_until_ready(act_layer(x_big, "gelu"))
    assert jnp.allclose(y_big, _apply_act(x_big, "gelu"), atol=1e-5, rtol=1e-5)

    # bf16 fast path (dtype-aware block sizing, native-dtype relu).
    x_bf = jax.random.normal(k1, (2, 8, 16, 16), dtype=jnp.bfloat16)
    for act_fun in ("gelu", "relu"):
        y_bf = jax.block_until_ready(act_layer(x_bf, act_fun))
        assert y_bf.dtype == jnp.bfloat16
        assert jnp.allclose(y_bf.astype(jnp.float32),
                            _apply_act(x_bf, act_fun).astype(jnp.float32),
                            atol=1e-2, rtol=1e-2), act_fun

    # Ragged (non-128-divisible) path: 128-aligned prefix + <128 tail.
    k2 = jax.random.PRNGKey(2)
    x_odd = jax.random.normal(k2, (2, 3, 7, 5), dtype=jnp.float32)
    y_odd = jax.block_until_ready(act_layer(x_odd, "gelu"))
    assert y_odd.shape == x_odd.shape and y_odd.dtype == x_odd.dtype
    assert jnp.allclose(y_odd, _apply_act(x_odd, "gelu"), atol=1e-5, rtol=1e-5)

    print("KERNEL_OK")
</pallas_src>

<mosaic_0001>
module attributes {stable_mosaic.version = 11 : i64} {
  func.func @_act_kernel(%arg0: i32, %arg1: memref<16x128xf32, #tpu.memory_space<vmem>>, %arg2: memref<16x128xf32, #tpu.memory_space<vmem>>) attributes {dimension_semantics = [#tpu.dimension_semantics<parallel>], iteration_bounds = array<i64: 1>, scalar_prefetch = 0 : i64, scratch_operands = 0 : i64, tpu.core_type = #tpu.core_type<tc>, window_params = [{transform_indices = @transform_0, window_bounds = array<i64: 16, 128>}, {transform_indices = @transform_1, window_bounds = array<i64: 16, 128>}]} {
    %c0 = arith.constant 0 : index
    %c0_0 = arith.constant 0 : index
    %0 = vector.load %arg1[%c0, %c0_0] : memref<16x128xf32, #tpu.memory_space<vmem>>, vector<16x128xf32>
    %cst = arith.constant 5.000000e-01 : f32
    %1 = vector.broadcast %cst : f32 to vector<16x128xf32>
    %2 = arith.mulf %1, %0 : vector<16x128xf32>
    %cst_1 = arith.constant 0.707106769 : f32
    %3 = vector.broadcast %cst_1 : f32 to vector<16x128xf32>
    %4 = arith.mulf %0, %3 : vector<16x128xf32>
    %5 = math.erf %4 : vector<16x128xf32>
    %cst_2 = arith.constant 1.000000e+00 : f32
    %6 = vector.broadcast %cst_2 : f32 to vector<16x128xf32>
    %7 = arith.addf %6, %5 : vector<16x128xf32>
    %8 = arith.mulf %2, %7 : vector<16x128xf32>
    %c0_3 = arith.constant 0 : index
    %c0_4 = arith.constant 0 : index
    %9 = vector.load %arg2[%c0_3, %c0_4] : memref<16x128xf32, #tpu.memory_space<vmem>>, vector<16x128xf32>
    tpu.vector_store %arg2[%c0_3, %c0_4], %8 {strides = array<i32>} : memref<16x128xf32, #tpu.memory_space<vmem>>, vector<16x128xf32>,
    return
  }
  func.func @transform_0(%arg0: i32) -> (i32, i32) {
    %c0_i32 = arith.constant 0 : i32
    %c0_i32_0 = arith.constant 0 : i32
    return %arg0, %c0_i32 : i32, i32
  }
  func.func @transform_1(%arg0: i32) -> (i32, i32) {
    %c0_i32 = arith.constant 0 : i32
    %c0_i32_0 = arith.constant 0 : i32
    return %arg0, %c0_i32 : i32, i32
  }
}

</mosaic_0001>

<bundles_post_ra>
// kernel: tpu_custom_call.1
= control target key start
LH: loop header
LB: loop body
LE: loop exit
PB: predicated region body
PF: predicated region fallthrough
CT: control target
= control target key end

     0   :  { %6 = vsyncpa [#allocation3], 0  ;;  %s154_s0 = inlined_call_operand.hbm [shape: f32[16,128], index: 0, kind: input, shape index: {}]   ;;  %s155_s1 = inlined_call_operand.hbm [shape: f32[16,128], index: 1, kind: output, shape index: {}]  }
   0x1   :  { %7 = vsyncpa [#allocation4], 0  ;;  %s110_s6 = smov [#allocation2]   ;;  %s62_s10 = scalar_lea.hbm %s154_s0, 256 }
   0x2   :  { %s13_s7 = sshll.u32 %s110_s6, 4  ;;  %p63_p0 = scmp.ne.s32.totalorder %s154_s0, %s62_s10  ;;  %s14_s7 = int_to_ptr.vmem [resolvable:$true] %s13_s7 }
   0x3   :  { %p66_p1 = scmp.lt.u32.totalorder %s62_s10, %s154_s0 }
   0x5   :  { %p68_p2 = pnand %p66_p1, %p63_p0 }
   0x7   :  { %71 = shalt.err (!%p68_p2)
}
   0x8   :  { %s72_s15 = scalar_lea.vmem %s14_s7, 256  ;;  %p77_p4 = scmp.lt.s32.totalorder %s14_s7, %s14_s7 }
   0x9   :  { %p73_p3 = scmp.ne.s32.totalorder %s14_s7, %s72_s15  ;;  %p78_p5 = scmp.lt.s32.totalorder %s72_s15, %s72_s15 }
   0xb   :  { %p79_p6 = por %p78_p5, %p77_p4 }
   0xd   :  { %p80_p7 = pnand %p79_p6, %p73_p3 }
   0xf   :  { %83 = shalt.err (!%p80_p7)
}
  0x10   :  { %s111_s16 = smov 128   ;;  %s112_s17 = smov 8  }
  0x11   :  { %19 = dma.hbm_to_vmem [thread:$0]  %s154_s0, 256, %s14_s7, [#allocation3], %s111_s16, %s111_s16, %s112_s17  }
  0x12   :  { %106 = dma.done.wait [#allocation3], 256  }
  0x13   :  { %107 = vsyncadd [#allocation3], 4294967040  ;;  %v23_v0 = vld [vmem:[#allocation2] sm:$0xff]  ;;  %v24_v1 = vld [vmem:[#allocation2 + $0x8] sm:$0xff]  ;;  %s113_s20 = smov [#allocation5]  }
  0x14   :  { %v27_v2 = vmul.f32 0.70710677, %v23_v0  ;;  %v28_v3 = vmul.f32 0.70710677, %v24_v1  ;;  %v25_v4 = vmul.f32 0.5, %v23_v0  ;;  %v26_v6 = vmul.f32 0.5, %v24_v1 }
  0x15   :  { %s42_s21 = sshll.u32 %s113_s20, 4  ;;  %s43_s21 = int_to_ptr.vmem [resolvable:$true] %s42_s21 }
  0x16   :  { %58 = verf.f32 %v27_v2  ;;  %s84_s0 = scalar_lea.vmem %s43_s21, 256  ;;  %p89_p9 = scmp.lt.s32.totalorder %s43_s21, %s43_s21 }
  0x17   :  { %60 = verf.f32 %v28_v3  ;;  %p85_p8 = scmp.ne.s32.totalorder %s43_s21, %s84_s0  ;;  %p90_p10 = scmp.lt.s32.totalorder %s84_s0, %s84_s0 }
  0x19   :  { %p91_p11 = por %p90_p10, %p89_p9 }
  0x1b   :  { %p92_p12 = pnand %p91_p11, %p85_p8 }
  0x20   :  { %v59_v5 = vpop.eup %58 }
  0x21   :  { %v61_v7 = vpop.eup %60  ;;  %v31_v8 = vadd.f32 1.0, %v59_v5 }
  0x22   :  { %v32_v9 = vadd.f32 1.0, %v61_v7 }
  0x23   :  { %v33_v10 = vmul.f32 %v31_v8, %v25_v4 }
  0x24   :  { %v34_v11 = vmul.f32 %v32_v9, %v26_v6 }
  0x25   :  { %35 = vst [vmem:[#allocation5] sm:$0xff] %v33_v10 }
  0x26   :  { %36 = vst [vmem:[#allocation5 + $0x8] sm:$0xff] %v34_v11 }
  0x27   :  { %95 = shalt.err (!%p92_p12)
}
  0x28   :  { %s96_s24 = scalar_lea.hbm %s155_s1, 256 }
  0x29   :  { %p97_p13 = scmp.ne.s32.totalorder %s155_s1, %s96_s24  ;;  %p100_p0 = scmp.lt.u32.totalorder %s96_s24, %s155_s1 }
  0x2b   :  { %p102_p1 = pnand %p100_p0, %p97_p13 }
  0x2d   :  { %105 = shalt.err (!%p102_p1)
}
  0x2e   :  { %48 = dma.vmem_to_hbm [thread:$0]  %s43_s21, 256, %s155_s1, [#allocation4], %s111_s16, %s111_s16, %s112_s17  }
  0x2f   :  { %108 = dma.done.wait [#allocation4], 256  }
  0x30   :  { %109 = vsyncadd [#allocation4], 4294967040 }
  0x31   :  { %52 = vsyncpa [#allocation3], 1 }
  0x32   :  { %53 = vsyncpa [#allocation4], 1 }

</bundles_post_ra>
